<compile_context>
chip_gen: v7x
topology: tpu7x:2x2x1
jax: 0.10.0
libtpu: 0.0.40
codegen_flags: <defaults>
</compile_context>

<pallas_src>
import jax
import jax.numpy as jnp
from jax.experimental import pallas as pl
from jax.experimental.pallas import tpu as pltpu


def _dropout_scale_kernel(scale_ref, x_ref, o_ref):
    # scale_ref: (row_tile, 1); x_ref / o_ref: (row_tile, L).
    o_ref[...] = x_ref[...] * scale_ref[...]


def _pick_row_tile(M, L, itemsize, target_block_bytes=2 << 20):
    """Rows per block: ~target_block_bytes, sublane-aligned, >= 2 grid steps."""
    # Sublane multiple: 8 for 4-byte, 16 for 2-byte, 32 for 1-byte dtypes.
    sub = 8 * max(1, 4 // itemsize)
    rnd = lambda v: ((v + sub - 1) // sub) * sub
    rt = max(sub, (target_block_bytes // max(L * itemsize, 1)) // sub * sub)
    # Prefer at least 2 grid steps so the parallel 1-D grid can be sharded
    # across the two TensorCores on v7x (no-op on v5e/v6e).
    rt = min(rt, max(sub, rnd((M + 1) // 2)))
    if rt >= M:
        rt = M  # single block spanning the full row axis (always legal)
    return rt


def complex_spatial_dropout2d(x, key, p=0.0, training=True, row_tile=None):
    """Forward pass of ComplexSpatialDropout2d.

    x: (N, 2, C, H, W) array.  Returns an array of the same shape/dtype.
    Mask generation (glue) is done in plain JAX; the masking/scaling over the
    full tensor is done in the Pallas kernel.
    """
    assert x.ndim == 5, "Expected (N,2,C,H,W) format."
    assert x.shape[1] == 2, "Expected real/imag in dim=1."
    N, _, C, H, W = x.shape
    dtype = x.dtype

    # Fast paths: no kernel launch (and no HBM traffic) when the op is an
    # identity or drops everything.
    if (not training) or p == 0.0:
        return x
    if p >= 1.0:
        return jnp.zeros_like(x)

    # One Bernoulli(1-p) draw per (n, c); scale computed in f32 (as PyTorch
    # does), then cast to the input dtype.
    keep = jax.random.bernoulli(key, 1.0 - p, (N, C))
    scale_nc = (keep.astype(jnp.float32) / jnp.float32(1.0 - p)).astype(dtype)

    M = N * 2 * C
    L = H * W
    itemsize = jnp.dtype(dtype).itemsize
    if row_tile is None:
        row_tile = _pick_row_tile(M, L, itemsize)

    # Per-row scale column, shared by the real/imag pair of every channel.
    scale_rows = jnp.broadcast_to(scale_nc[:, None, :], (N, 2, C)).reshape(M, 1)
    x_rows = x.reshape(M, L)

    grid = (pl.cdiv(M, row_tile),)

    # VMEM budget: x + out double-buffered blocks plus the lane-padded scale
    # column; leave headroom and stay within every generation's physical VMEM.
    block_bytes = row_tile * L * itemsize
    scale_block_bytes = row_tile * 128 * itemsize  # (row_tile, 1) lane-padded
    vmem_needed = 4 * block_bytes + 2 * scale_block_bytes
    vmem_limit = int(min(max(vmem_needed + (2 << 20), 16 << 20), 64 << 20))

    cost = pl.CostEstimate(
        flops=M * L,
        transcendentals=0,
        bytes_accessed=2 * M * L * itemsize + M * itemsize,
    )

    out = pl.pallas_call(
        _dropout_scale_kernel,
        out_shape=jax.ShapeDtypeStruct((M, L), dtype),
        grid_spec=pltpu.PrefetchScalarGridSpec(
            num_scalar_prefetch=0,
            grid=grid,
            in_specs=[
                pl.BlockSpec((row_tile, 1), lambda i: (i, 0)),
                pl.BlockSpec((row_tile, L), lambda i: (i, 0)),
            ],
            out_specs=pl.BlockSpec((row_tile, L), lambda i: (i, 0)),
        ),
        compiler_params=pltpu.CompilerParams(
            dimension_semantics=("parallel",),
            vmem_limit_bytes=vmem_limit,
        ),
        # Reuse x's HBM buffer for the output (free when x is an intermediate
        # inside a larger jit; XLA inserts a defensive copy otherwise).
        input_output_aliases={1: 0},
        cost_estimate=cost,
    )(scale_rows, x_rows)

    return out.reshape(N, 2, C, H, W)


def _reference(x, key, p, training=True):
    """Pure-JAX reference mirroring nn.Dropout3d on the transposed tensor."""
    N, _, C, H, W = x.shape
    if (not training) or p == 0.0:
        return x
    if p >= 1.0:
        return jnp.zeros_like(x)
    keep = jax.random.bernoulli(key, 1.0 - p, (N, C))
    scale = (keep.astype(jnp.float32) / jnp.float32(1.0 - p)).astype(x.dtype)
    return x * scale[:, None, :, None, None]


if __name__ == "__main__":
    key = jax.random.PRNGKey(0)
    k_data, k_mask, k_data2 = jax.random.split(key, 3)

    # Case 1: (N,2,C,H,W) = (2,2,4,16,16), training, p=0.5.
    N, C, H, W = 2, 4, 16, 16
    x = jax.random.normal(k_data, (N, 2, C, H, W), dtype=jnp.float32)
    p = 0.5
    y = jax.block_until_ready(
        complex_spatial_dropout2d(x, k_mask, p=p, training=True))
    y_ref = _reference(x, k_mask, p=p, training=True)
    assert y.shape == x.shape and y.dtype == x.dtype
    assert jnp.allclose(y, y_ref, atol=1e-6), "mismatch vs reference (p=0.5)"
    # Real/imag of each channel must be dropped together.
    zr = (y[:, 0].reshape(N, C, -1) == 0).all(-1)
    zi = (y[:, 1].reshape(N, C, -1) == 0).all(-1)
    assert bool((zr == zi).all()), "real/imag dropped inconsistently"

    # Case 2: row count (N*2*C = 10) not a multiple of the row tile ->
    # exercises the ragged last block (masked tail writes, no host padding).
    N2, C2 = 1, 5
    x2 = jax.random.normal(k_data2, (N2, 2, C2, H, W), dtype=jnp.float32)
    y2 = jax.block_until_ready(
        complex_spatial_dropout2d(x2, k_mask, p=0.3, training=True))
    y2_ref = _reference(x2, k_mask, p=0.3, training=True)
    assert jnp.allclose(y2, y2_ref, atol=1e-6), "mismatch vs reference (ragged rows)"

    # Fast paths (no kernel launch).
    y0 = jax.block_until_ready(
        complex_spatial_dropout2d(x, k_mask, p=0.0, training=True))
    assert jnp.allclose(y0, x, atol=1e-6), "p=0 should be identity"
    ye = jax.block_until_ready(
        complex_spatial_dropout2d(x, k_mask, p=0.7, training=False))
    assert jnp.allclose(ye, x, atol=1e-6), "eval mode should be identity"
    y1 = jax.block_until_ready(
        complex_spatial_dropout2d(x, k_mask, p=1.0, training=True))
    assert jnp.allclose(y1, jnp.zeros_like(x)), "p=1 should zero everything"

    print("KERNEL_OK")
</pallas_src>

<mosaic_0001>
module attributes {stable_mosaic.version = 11 : i64} {
  func.func @_dropout_scale_kernel(%arg0: i32, %arg1: memref<8x1xf32, #tpu.memory_space<vmem>>, %arg2: memref<8x256xf32, #tpu.memory_space<vmem>>, %arg3: memref<8x256xf32, #tpu.memory_space<vmem>>) attributes {dimension_semantics = [#tpu.dimension_semantics<parallel>], iteration_bounds = array<i64: 2>, scalar_prefetch = 0 : i64, scratch_operands = 0 : i64, tpu.core_type = #tpu.core_type<tc>, window_params = [{transform_indices = @transform_0, window_bounds = array<i64: 8, 1>}, {transform_indices = @transform_1, window_bounds = array<i64: 8, 256>}, {transform_indices = @transform_2, window_bounds = array<i64: 8, 256>}]} {
    %c0 = arith.constant 0 : index
    %c0_0 = arith.constant 0 : index
    %0 = vector.load %arg2[%c0, %c0_0] : memref<8x256xf32, #tpu.memory_space<vmem>>, vector<8x256xf32>
    %c0_1 = arith.constant 0 : index
    %c0_2 = arith.constant 0 : index
    %1 = vector.load %arg1[%c0_1, %c0_2] : memref<8x1xf32, #tpu.memory_space<vmem>>, vector<8x1xf32>
    %2 = vector.broadcast %1 : vector<8x1xf32> to vector<8x256xf32>
    %3 = arith.mulf %0, %2 : vector<8x256xf32>
    %c0_3 = arith.constant 0 : index
    %c0_4 = arith.constant 0 : index
    %4 = vector.load %arg3[%c0_3, %c0_4] : memref<8x256xf32, #tpu.memory_space<vmem>>, vector<8x256xf32>
    tpu.vector_store %arg3[%c0_3, %c0_4], %3 {strides = array<i32>} : memref<8x256xf32, #tpu.memory_space<vmem>>, vector<8x256xf32>,
    return
  }
  func.func @transform_0(%arg0: i32) -> (i32, i32) {
    %c0_i32 = arith.constant 0 : i32
    %c0_i32_0 = arith.constant 0 : i32
    return %arg0, %c0_i32 : i32, i32
  }
  func.func @transform_1(%arg0: i32) -> (i32, i32) {
    %c0_i32 = arith.constant 0 : i32
    %c0_i32_0 = arith.constant 0 : i32
    return %arg0, %c0_i32 : i32, i32
  }
  func.func @transform_2(%arg0: i32) -> (i32, i32) {
    %c0_i32 = arith.constant 0 : i32
    %c0_i32_0 = arith.constant 0 : i32
    return %arg0, %c0_i32 : i32, i32
  }
}

</mosaic_0001>

<bundles_post_ra>
// kernel: tpu_custom_call.1
= control target key start
LH: loop header
LB: loop body
LE: loop exit
PB: predicated region body
PF: predicated region fallthrough
CT: control target
= control target key end

     0   :  { %7 = vsyncpa [#allocation3], 0  ;;  %s633_s0 = inlined_call_operand.vmem [shape: f32[16,1], index: 0, kind: input, shape index: {}]   ;;  %s634_s1 = inlined_call_operand.hbm [shape: f32[16,256], index: 1, kind: input, shape index: {}, may-alias: {1,2}]   ;;  %s635_s2 = inlined_call_operand.hbm [shape: f32[16,256], index: 2, kind: output, shape index: {}, may-alias: {1,2}]  }
   0x1   :  { %9 = vsyncpa [#allocation3 + $0x1], 0 }
   0x2   :  { %10 = vsyncpa [#allocation4], 0 }
   0x3   :  { %12 = vsyncpa [#allocation4 + $0x1], 0  ;;  %s467_s9 = smov 0   ;;  %s469_s10 = smov 0  }
   0x4   :  { %s471_s11 = smov 0   ;;  %s473_s12 = smov 0  }
   0x5 LB: > { %s488_s13 = sadd.s32 4294967295, %s447_s12   ;;  %s286_s14 = sadd.s32 4294967294, %s447_s12   ;;  %s447_s12 = sphi %s473_s12, %s650_s12   ;;  %s443_s11 = sphi %s471_s11, %s649_s11   ;;  %s439_s10 = sphi %s469_s10, %s648_s10   ;;  %s435_s9 = sphi %s467_s9, %s647_s9  }
   0x6   : > { %s492_s15 = sadd.s32 1, %s447_s12   ;;  %s51_s16 = sadd.s32 1, %s443_s11 }
   0x7   : > { %s48_s17 = ssub.s32 %s447_s12, %s492_s15  ;;  %p58_p0 = scmp.ne.s32.totalorder %s443_s11, %s439_s10 }
   0x8   : > { %p49_p1 = scmp.eq.s32.totalorder %s48_s17, 0  ;;  %p59_p2 = scmp.eq.s32.totalorder %s447_s12, 0 }
   0x9   : > { %p64_p3 = scmp.ne.s32.totalorder %s439_s10, %s435_s9  ;;  %p65_p4 = scmp.eq.s32.totalorder %s488_s13, 0 }
   0xa   : > { %s504_s18 = scalar_select %p49_p1, %s443_s11, %s51_s16  }
   0xb   : > { %p506_p5 = por %p59_p2, %p58_p0  ;;  %p510_p6 = por %p65_p4, %p64_p3 }
   0xc   : > { %p88_p7 = scmp.eq.s32.totalorder %s488_s13, 1  ;;  %p94_p8 = scmp.eq.s32.totalorder %s286_s14, 1 }
   0xd   : > { %p315_p10 = scmp.lt.s32.totalorder %s447_s12, 2  ;;  %s121_s23 = sand.u32 1, %s443_s11  }
   0xe   : > { %p517_p11 = por %p88_p7, %p58_p0  ;;  %p521_p12 = por %p94_p8, %p64_p3 }
   0xf   : > { %s301_s24 = sshll.u32 %s447_s12, 8  ;;  %s289_s25 = sshll.u32 %s121_s23, 4 }
  0x10   : > { %s639_s21 = scalar_select %p517_p11, 1, 0 }
  0x11   : > { %s640_s22 = scalar_select %p521_p12, 1, 0 }
  0x12   : > { %s530_s28 = scalar_lea.hbm %s634_s1, %s301_s24  ;;  %s125_s29 = scalar_lea.vmem [#allocation2], %s289_s25 }
  0x13   : > { %s133_s30 = sshll.u32 %s125_s29, 4  ;;  %p534_p13 = pnand %p315_p10, %p506_p5  ;;  %s538_s30 = int_to_ptr.vmem [resolvable:$true] %s133_s30 }
  0x14   : > { %s122_s4 = scalar_lea.sflag [#allocation3], %s121_s23  ;;  %s351_s5 = scalar_lea.hbm %s530_s28, 256 }
  0x15   : > { %p352_p2 = scmp.ne.s32.totalorder %s530_s28, %s351_s5  ;;  %p353_p3 = pneg %p534_p13 }
  0x16   : > { %s356_s8 = scalar_lea.hbm %s634_s1, 512  ;;  %p357_p5 = scmp.lt.u32.totalorder %s530_s28, %s634_s1 }
  0x17   : > { %p354_p4 = pnand %p353_p3, %p352_p2  ;;  %p358_p8 = scmp.lt.u32.totalorder %s356_s8, %s351_s5 }
  0x18   : > { %p360_p9 = scmp.lt.u32.totalorder %s351_s5, %s530_s28 }
  0x19   : > { %p355_p7 = pneg %p354_p4  ;;  %p359_p10 = por %p358_p8, %p357_p5 }
  0x1b   : > { %p361_p0 = por %p360_p9, %p359_p10 }
  0x1d   : > { %p362_p1 = pnand %p361_p0, %p355_p7 }
  0x1f   : > { %365 = shalt.err (!%p362_p1)
}
  0x20   : > { %s366_s17 = scalar_lea.vmem %s538_s30, 256  ;;  %s449_s19 = smov [#allocation2]  }
  0x21   : > { %p367_p2 = scmp.ne.s32.totalorder %s538_s30, %s366_s17  ;;  %s371_s23 = sshll.u32 %s449_s19, 4  ;;  %s372_s23 = int_to_ptr.vmem [resolvable:$false] %s371_s23 }
  0x22   : > { %s373_s24 = scalar_lea.vmem %s372_s23, 512  ;;  %p374_p11 = scmp.lt.s32.totalorder %s538_s30, %s372_s23 }
  0x23   : > { %p369_p4 = pnand %p367_p2, %p353_p3  ;;  %p375_p5 = scmp.lt.s32.totalorder %s373_s24, %s366_s17 }
  0x25   : > { %p370_p12 = pneg %p369_p4  ;;  %p376_p8 = por %p375_p5, %p374_p11 }
  0x27   : > { %p377_p9 = pnand %p376_p8, %p370_p12 }
  0x29   : > { %380 = shalt.err (!%p377_p9)
}
  0x2a   : > { %310 = dma.hbm_to_vmem [thread:$0]  (!%p534_p13), %s530_s28, 256, %s538_s30, %s122_s4  }
  0x2b   : > { %p642_p0 = scmp.lt.s32.totalorder %s447_s12, 3  ;;  %p643_p1 = scmp.ge.s32.totalorder %s447_s12, 1 }
  0x2d   : > { %p139_p3 = pnand %p643_p1, %p642_p0 }
  0x2e   : > { %s572_s25 = sand.u32 (!%p139_p3), 1, %s439_s10  }
  0x2f   : > { %142 = sbr.rel (%p139_p3) target bundleno = 206 (0xce), region = 28  ;;  %s293_s26 = sshll.u32 (!%p139_p3), %s572_s25, 4 }
  0x30   : > { %s145_s27 = scalar_lea.sflag (!%p139_p3), [#allocation3], %s572_s25  ;;  %s148_s29 = scalar_lea.vmem (!%p139_p3), [#allocation2], %s293_s26 }
  0x36   : > { %426 = dma.done.wait (%p510_p6), %s145_s27, 256  }
  0x37   : > { %428 = vsyncadd (%p510_p6), %s145_s27, 4294967040  ;;  %p173_p11 = scmp.lt.s32.totalorder %s488_s13, 1  ;;  %v450_v0 = vmov 0   ;;  %v177_v2 = vld [vmem:[%s148_s29] sm:$0xff]  ;;  %v178_v3 = vld [vmem:[%s148_s29 + $0x8] sm:$0xff]  ;;  %s302_s20 = sshll.u32 %s488_s13, 8 }
  0x38   : > { %350 = vset.pattern.permute.xlu0 %v450_v0  ;;  %s172_s6 = scalar_lea.vmem [#allocation5], %s293_s26  ;;  %s589_s16 = scalar_lea.hbm %s635_s2, %s302_s20 }
  0x39   : > { %s174_s28 = scalar_select %p173_p11, %s488_s13, 1 }
  0x3a   : > { %s204_s7 = sshll.u32 %s172_s6, 4  ;;  %s190_s17 = scalar_lea.sflag [#allocation4], %s572_s25  ;;  %s591_s7 = int_to_ptr.vmem [resolvable:$true] %s204_s7 }
  0x3b   : > { %s295_s30 = sshll.u32 %s174_s28, 3  ;;  %s381_s19 = scalar_lea.vmem %s591_s7, 256 }
  0x3c   : > { %s176_s5 = scalar_lea.vmem %s633_s0, %s295_s30  ;;  %p382_p6 = scmp.ne.s32.totalorder %s591_s7, %s381_s19 }
  0x3d   : > { %v179_v1 = vld [vmem:[%s176_s5] sm:$0xff]  ;;  %p644_p12 = scmp.ne.s32.totalorder %s639_s21, 0  ;;  %s451_s13 = smov [#allocation5]  }
  0x3e   : > { %182 = vperm.xlu0 %350, %v179_v1   ;;  %s385_s23 = sshll.u32 %s451_s13, 4  ;;  %s386_s23 = int_to_ptr.vmem [resolvable:$false] %s385_s23 }
  0x3f   : > { %p383_p13 = pnand %p382_p6, %p644_p12  ;;  %s387_s24 = scalar_lea.vmem %s386_s23, 512 }
  0x40   : > { %p388_p10 = scmp.lt.s32.totalorder %s591_s7, %s386_s23  ;;  %p389_p2 = scmp.lt.s32.totalorder %s387_s24, %s381_s19 }
  0x41   : > { %p384_p7 = pneg %p383_p13 }
  0x42   : > { %p390_p4 = por %p389_p2, %p388_p10 }
  0x44   : > { %p391_p5 = pnand %p390_p4, %p384_p7 }
  0xbd   : > { %v183_v4 = vpop.permute.xlu0 %182 }
  0xbe   : > { %v185_v5 = vmul.f32 %v183_v4, %v177_v2  ;;  %v186_v6 = vmul.f32 %v183_v4, %v178_v3 }
  0xc0   : > { %187 = vst [vmem:[%s172_s6] sm:$0xff] %v185_v5  ;;  %188 = vst [vmem:[%s172_s6 + $0x8] sm:$0xff] %v186_v6 }
  0xc1   : > { %394 = shalt.err (!%p391_p5)
}
  0xc2   : > { %s395_s25 = scalar_lea.hbm %s589_s16, 256  ;;  %s399_s29 = scalar_lea.hbm %s635_s2, 512 }
  0xc3   : > { %p396_p8 = scmp.ne.s32.totalorder %s589_s16, %s395_s25  ;;  %p400_p1 = scmp.lt.u32.totalorder %s589_s16, %s635_s2 }
  0xc4   : > { %p401_p3 = scmp.lt.u32.totalorder %s399_s29, %s395_s25  ;;  %p403_p6 = scmp.lt.u32.totalorder %s395_s25, %s589_s16 }
  0xc5   : > { %p397_p9 = pnand %p396_p8, %p644_p12 }
  0xc6   : > { %p402_p11 = por %p401_p3, %p400_p1 }
  0xc7   : > { %p398_p0 = pneg %p397_p9 }
  0xc8   : > { %p404_p13 = por %p403_p6, %p402_p11 }
  0xca   : > { %p405_p7 = pnand %p404_p13, %p398_p0 }
  0xcc   : > { %408 = shalt.err (!%p405_p7)
}
  0xcd   : > { %305 = dma.vmem_to_hbm [thread:$0]  (%p644_p12), %s591_s7, 256, %s589_s16, %s190_s17  }
  0xce PF: > { %s216_s3 = sand.u32 1, %s435_s9   ;;  %p645_p10 = scmp.ne.s32.totalorder %s640_s22, 0 }
  0xcf   : > { %p646_p2 = scmp.ge.s32.totalorder %s447_s12, 2  ;;  %s217_s4 = scalar_lea.sflag [#allocation4], %s216_s3 }
  0xd1   : > { %p312_p4 = pnand %p646_p2, %p645_p10 }
  0xd3   : > { %430 = dma.done.wait (!%p312_p4), %s217_s4, 256  }
  0xd4   : > { %432 = vsyncadd (!%p312_p4), %s217_s4, 4294967040  ;;  %p15_p5 = scmp.ge.s32.totalorder %s492_s15, 4   ;;  %s647_s9 = smov %s439_s10 }
  0xd5   : > { %s648_s10 = smov %s443_s11  ;;  %s649_s11 = smov %s504_s18 }
  0xd6   : > { %s650_s12 = smov %s492_s15  ;;  %17 = sbr.rel (!%p15_p5) target bundleno = 5 (0x5), region = 76 }
  0xdd   :  { %222 = vsyncpa [#allocation3], 1 }
  0xde   :  { %224 = vsyncpa [#allocation3 + $0x1], 1 }
  0xdf   :  { %225 = vsyncpa [#allocation4], 1 }
  0xe0   :  { %227 = vsyncpa [#allocation4 + $0x1], 1 }

</bundles_post_ra>
